<compile_context>
chip_gen: v5e
topology: v5e:2x2
jax: 0.10.0
libtpu: 0.0.40
codegen_flags: <defaults>
</compile_context>

<pallas_src>
import functools

import jax
import jax.numpy as jnp
from jax.experimental import pallas as pl
from jax.experimental.pallas import tpu as pltpu

LN_EPS = 1e-5  # PyTorch nn.LayerNorm default


def _round_up(v, m):
    return (v + m - 1) // m * m


def _prenormdrop_kernel(x_ref, g_ref, b_ref, w_ref, fb_ref, *rest,
                        keep_thr, inv_keep):
    # Optional trailing dropout-bits ref (only present when p > 0).
    if keep_thr is None:
        (o_ref,) = rest
        bits_ref = None
    else:
        bits_ref, o_ref = rest

    # ---- LayerNorm over the lane (hidden) dim; f32 stats, biased variance ----
    x = x_ref[...].astype(jnp.float32)
    mean = jnp.mean(x, axis=-1, keepdims=True)
    centered = x - mean
    var = jnp.mean(centered * centered, axis=-1, keepdims=True)
    xn = centered * jax.lax.rsqrt(var + LN_EPS)
    xn = xn * g_ref[...].astype(jnp.float32) + b_ref[...].astype(jnp.float32)

    # ---- fn: Linear(dim, dim) on the MXU ----
    # Matmul in the weight's native dtype (bf16 weights -> full MXU rate),
    # f32 accumulation.  No f32 upcast of the (D, D) weight tile.
    y = jnp.dot(xn.astype(w_ref.dtype), w_ref[...],
                preferred_element_type=jnp.float32)
    y = y + fb_ref[...].astype(jnp.float32)

    # ---- Dropout: inverted dropout, raw uint32 threshold compare ----
    if keep_thr is not None:
        keep = bits_ref[...] >= jnp.uint32(keep_thr)
        y = jnp.where(keep, y * inv_keep, 0.0)

    o_ref[...] = y.astype(o_ref.dtype)


def prenormdrop(x, gamma, beta, w, fn_bias, *, dropout_rate, rng_key=None,
                training=True, block_rows=256):
    """x: (B, N, D) -> (B, N, D).  w is the (D, D) matrix applied as xn @ w."""
    B, N, D = x.shape
    rows = B * N
    dtype = x.dtype
    p = float(dropout_rate) if training else 0.0
    assert 0.0 <= p < 1.0

    # Row tile: multiple of 8 (f32) / 16 (bf16); sized for pipelining, capped
    # by the actual row count at small shapes.
    row_mult = 8 if jnp.dtype(dtype).itemsize >= 4 else 16
    tm = min(block_rows, _round_up(rows, row_mult))
    rows_p = _round_up(rows, tm)
    grid = (pl.cdiv(rows_p, tm),)

    x2 = x.reshape(rows, D)
    if rows_p != rows:
        x2 = jnp.pad(x2, ((0, rows_p - rows), (0, 0)))

    in_specs = [
        pl.BlockSpec((tm, D), lambda i: (i, 0)),   # x row tile (pipelined)
        pl.BlockSpec((1, D), lambda i: (0, 0)),    # LN gamma (resident)
        pl.BlockSpec((1, D), lambda i: (0, 0)),    # LN beta
        # Weight: constant index_map -> fetched once and kept resident.
        # For very large D on v7x (64 MiB VMEM) consider pipeline_mode=
        # pl.Buffered(1) or a column-tile grid axis over the weight's N dim.
        pl.BlockSpec((D, D), lambda i: (0, 0)),    # fn weight
        pl.BlockSpec((1, D), lambda i: (0, 0)),    # fn bias
    ]
    args = [x2, gamma.reshape(1, D), beta.reshape(1, D), w, fn_bias.reshape(1, D)]

    keep_thr = None
    inv_keep = 1.0
    if p > 0.0:
        # TODO(synk): use in-kernel pltpu.prng_random_bits on real TPU to avoid
        # the extra 4 B/elem HBM read; it has no CPU/interpret lowering here.
        keep_thr = int(min(0xFFFFFFFF, round(p * float(2 ** 32))))
        inv_keep = 1.0 / (1.0 - p)
        if rng_key is None:
            rng_key = jax.random.PRNGKey(0)
        bits = jax.random.bits(rng_key, (rows, D), dtype=jnp.uint32)
        if rows_p != rows:
            bits = jnp.pad(bits, ((0, rows_p - rows), (0, 0)))
        in_specs.append(pl.BlockSpec((tm, D), lambda i: (i, 0)))
        args.append(bits)

    # VMEM budget: double-buffered x / out / bits tiles + resident weight.
    x_bytes = jnp.dtype(dtype).itemsize
    w_bytes = jnp.dtype(w.dtype).itemsize
    blk = tm * D
    vmem_need = (2 * blk * x_bytes                      # x tiles
                 + 2 * blk * x_bytes                    # out tiles
                 + (2 * blk * 4 if p > 0.0 else 0)      # dropout bits tiles
                 + 2 * D * D * w_bytes                  # weight buffers
                 + 8 * D * 4)                           # gamma/beta/bias
    vmem_limit = min(int(vmem_need * 1.5) + (4 << 20), 100 << 20)

    bytes_accessed = (rows_p * D * (2 * x_bytes + (4 if p > 0.0 else 0))
                      + D * D * w_bytes + 3 * D * 4)
    cost = pl.CostEstimate(flops=2 * rows_p * D * D,
                           transcendentals=rows_p,
                           bytes_accessed=bytes_accessed)

    out = pl.pallas_call(
        functools.partial(_prenormdrop_kernel,
                          keep_thr=keep_thr, inv_keep=inv_keep),
        out_shape=jax.ShapeDtypeStruct((rows_p, D), dtype),
        grid=grid,
        in_specs=in_specs,
        out_specs=pl.BlockSpec((tm, D), lambda i: (i, 0)),
        compiler_params=pltpu.CompilerParams(
            dimension_semantics=("parallel",),   # independent row tiles
            vmem_limit_bytes=vmem_limit),
        cost_estimate=cost,
    )(*args)

    return out[:rows].reshape(B, N, D)


def _reference_no_dropout(x, gamma, beta, w, fn_bias):
    xf = x.astype(jnp.float32)
    mean = jnp.mean(xf, axis=-1, keepdims=True)
    var = jnp.mean((xf - mean) ** 2, axis=-1, keepdims=True)
    xn = (xf - mean) * jax.lax.rsqrt(var + LN_EPS) * gamma + beta
    return (xn @ w.astype(jnp.float32) + fn_bias).astype(x.dtype)


if __name__ == "__main__":
    key = jax.random.PRNGKey(0)
    B, N, D = 2, 8, 128        # D = 128 -> lane-dense hidden dim
    dropout_rate = 0.1

    k_x, k_w, k_b, k_g, k_beta, k_drop = jax.random.split(key, 6)
    x = jax.random.normal(k_x, (B, N, D), dtype=jnp.float32)
    gamma = 1.0 + 0.1 * jax.random.normal(k_g, (D,), jnp.float32)      # LN weight
    beta = 0.05 * jax.random.normal(k_beta, (D,), jnp.float32)         # LN bias
    w = 0.02 * jax.random.normal(k_w, (D, D), jnp.float32)             # fn = Linear(dim, dim), applied as xn @ w
    fn_bias = 0.02 * jax.random.normal(k_b, (D,), jnp.float32)

    # Eval-mode (dropout disabled) must match the pure-JAX reference.
    out_eval = prenormdrop(x, gamma, beta, w, fn_bias,
                           dropout_rate=dropout_rate, training=False)
    ref = _reference_no_dropout(x, gamma, beta, w, fn_bias)
    assert jnp.allclose(out_eval, ref, atol=2e-4, rtol=2e-4), "eval mismatch"

    # Training mode: each output element must be 0 (dropped) or ref/(1-p).
    out_train = prenormdrop(x, gamma, beta, w, fn_bias,
                            dropout_rate=dropout_rate, rng_key=k_drop,
                            training=True)
    scaled = ref.astype(jnp.float32) / (1.0 - dropout_rate)
    is_zero = jnp.abs(out_train) <= 1e-6
    is_scaled = jnp.abs(out_train - scaled) <= 1e-3 * (1.0 + jnp.abs(scaled))
    assert bool(jnp.all(is_zero | is_scaled)), "train values not in {0, y/(1-p)}"
    keep_frac = float(jnp.mean(is_scaled.astype(jnp.float32)))
    assert 0.8 <= keep_frac <= 0.98, f"keep fraction {keep_frac:.3f} off"

    jax.block_until_ready((out_eval, out_train))
    print("KERNEL_OK")
</pallas_src>

<mosaic_0001>
module attributes {stable_mosaic.version = 11 : i64} {
  func.func @_prenormdrop_kernel(%arg0: i32, %arg1: memref<16x128xf32, #tpu.memory_space<vmem>>, %arg2: memref<1x128xf32, #tpu.memory_space<vmem>>, %arg3: memref<1x128xf32, #tpu.memory_space<vmem>>, %arg4: memref<128x128xf32, #tpu.memory_space<vmem>>, %arg5: memref<1x128xf32, #tpu.memory_space<vmem>>, %arg6: memref<16x128xf32, #tpu.memory_space<vmem>>) attributes {dimension_semantics = [#tpu.dimension_semantics<parallel>], iteration_bounds = array<i64: 1>, scalar_prefetch = 0 : i64, scratch_operands = 0 : i64, tpu.core_type = #tpu.core_type<tc>, window_params = [{transform_indices = @transform_0, window_bounds = array<i64: 16, 128>}, {pipeline_mode = #tpu.pipeline_mode<synchronous>, transform_indices = @transform_1, window_bounds = array<i64: 1, 128>}, {pipeline_mode = #tpu.pipeline_mode<synchronous>, transform_indices = @transform_2, window_bounds = array<i64: 1, 128>}, {pipeline_mode = #tpu.pipeline_mode<synchronous>, transform_indices = @transform_3, window_bounds = array<i64: 128, 128>}, {pipeline_mode = #tpu.pipeline_mode<synchronous>, transform_indices = @transform_4, window_bounds = array<i64: 1, 128>}, {transform_indices = @transform_5, window_bounds = array<i64: 16, 128>}]} {
    %c0 = arith.constant 0 : index
    %c0_0 = arith.constant 0 : index
    %0 = vector.load %arg1[%c0, %c0_0] : memref<16x128xf32, #tpu.memory_space<vmem>>, vector<16x128xf32>
    %cst = arith.constant dense<0.000000e+00> : vector<16xf32>
    %1 = vector.multi_reduction <add>, %0, %cst [1] : vector<16x128xf32> to vector<16xf32>
    %2 = vector.shape_cast %1 : vector<16xf32> to vector<16x1xf32>
    %cst_1 = arith.constant 1.280000e+02 : f32
    %3 = vector.broadcast %cst_1 : f32 to vector<16x1xf32>
    %4 = arith.divf %2, %3 : vector<16x1xf32>
    %5 = vector.broadcast %4 : vector<16x1xf32> to vector<16x128xf32>
    %6 = arith.subf %0, %5 : vector<16x128xf32>
    %7 = arith.mulf %6, %6 : vector<16x128xf32>
    %cst_2 = arith.constant dense<0.000000e+00> : vector<16xf32>
    %8 = vector.multi_reduction <add>, %7, %cst_2 [1] : vector<16x128xf32> to vector<16xf32>
    %9 = vector.shape_cast %8 : vector<16xf32> to vector<16x1xf32>
    %cst_3 = arith.constant 1.280000e+02 : f32
    %10 = vector.broadcast %cst_3 : f32 to vector<16x1xf32>
    %11 = arith.divf %9, %10 : vector<16x1xf32>
    %cst_4 = arith.constant 9.99999974E-6 : f32
    %12 = vector.broadcast %cst_4 : f32 to vector<16x1xf32>
    %13 = arith.addf %11, %12 : vector<16x1xf32>
    %14 = math.rsqrt %13 : vector<16x1xf32>
    %15 = vector.broadcast %14 : vector<16x1xf32> to vector<16x128xf32>
    %16 = arith.mulf %6, %15 : vector<16x128xf32>
    %c0_5 = arith.constant 0 : index
    %c0_6 = arith.constant 0 : index
    %17 = vector.load %arg2[%c0_5, %c0_6] : memref<1x128xf32, #tpu.memory_space<vmem>>, vector<1x128xf32>
    %18 = vector.broadcast %17 : vector<1x128xf32> to vector<16x128xf32>
    %19 = arith.mulf %16, %18 : vector<16x128xf32>
    %c0_7 = arith.constant 0 : index
    %c0_8 = arith.constant 0 : index
    %20 = vector.load %arg3[%c0_7, %c0_8] : memref<1x128xf32, #tpu.memory_space<vmem>>, vector<1x128xf32>
    %21 = vector.broadcast %20 : vector<1x128xf32> to vector<16x128xf32>
    %22 = arith.addf %19, %21 : vector<16x128xf32>
    %c0_9 = arith.constant 0 : index
    %c0_10 = arith.constant 0 : index
    %23 = vector.load %arg4[%c0_9, %c0_10] : memref<128x128xf32, #tpu.memory_space<vmem>>, vector<128x128xf32>
    %cst_11 = arith.constant dense<0.000000e+00> : vector<16x128xf32>
    %24 = tpu.matmul %22, %23, %cst_11 {dimension_numbers = #tpu.dot_dimension_numbers<[1], [0], [0], [1], [0, 0, 1, 1], [], []>} : vector<16x128xf32>, vector<128x128xf32>, vector<16x128xf32> -> vector<16x128xf32>
    %c0_12 = arith.constant 0 : index
    %c0_13 = arith.constant 0 : index
    %25 = vector.load %arg5[%c0_12, %c0_13] : memref<1x128xf32, #tpu.memory_space<vmem>>, vector<1x128xf32>
    %26 = vector.broadcast %25 : vector<1x128xf32> to vector<16x128xf32>
    %27 = arith.addf %24, %26 : vector<16x128xf32>
    %c0_14 = arith.constant 0 : index
    %c0_15 = arith.constant 0 : index
    %28 = vector.load %arg6[%c0_14, %c0_15] : memref<16x128xf32, #tpu.memory_space<vmem>>, vector<16x128xf32>
    tpu.vector_store %arg6[%c0_14, %c0_15], %27 {strides = array<i32>} : memref<16x128xf32, #tpu.memory_space<vmem>>, vector<16x128xf32>,
    return
  }
  func.func @transform_0(%arg0: i32) -> (i32, i32) {
    %c0_i32 = arith.constant 0 : i32
    %c0_i32_0 = arith.constant 0 : i32
    return %arg0, %c0_i32 : i32, i32
  }
  func.func @transform_1(%arg0: i32) -> (i32, i32) {
    %c0_i32 = arith.constant 0 : i32
    %c0_i32_0 = arith.constant 0 : i32
    %c0_i32_1 = arith.constant 0 : i32
    return %c0_i32, %c0_i32_0 : i32, i32
  }
  func.func @transform_2(%arg0: i32) -> (i32, i32) {
    %c0_i32 = arith.constant 0 : i32
    %c0_i32_0 = arith.constant 0 : i32
    %c0_i32_1 = arith.constant 0 : i32
    return %c0_i32, %c0_i32_0 : i32, i32
  }
  func.func @transform_3(%arg0: i32) -> (i32, i32) {
    %c0_i32 = arith.constant 0 : i32
    %c0_i32_0 = arith.constant 0 : i32
    %c0_i32_1 = arith.constant 0 : i32
    return %c0_i32, %c0_i32_0 : i32, i32
  }
  func.func @transform_4(%arg0: i32) -> (i32, i32) {
    %c0_i32 = arith.constant 0 : i32
    %c0_i32_0 = arith.constant 0 : i32
    %c0_i32_1 = arith.constant 0 : i32
    return %c0_i32, %c0_i32_0 : i32, i32
  }
  func.func @transform_5(%arg0: i32) -> (i32, i32) {
    %c0_i32 = arith.constant 0 : i32
    %c0_i32_0 = arith.constant 0 : i32
    return %arg0, %c0_i32 : i32, i32
  }
}

</mosaic_0001>

<bundles_post_ra>
// kernel: tpu_custom_call.1
= control target key start
LH: loop header
LB: loop body
LE: loop exit
PB: predicated region body
PF: predicated region fallthrough
CT: control target
= control target key end

     0   :  { %10 = vsyncpa [#allocation3], 0  ;;  %s400_s0 = inlined_call_operand.hbm [shape: f32[16,128], index: 0, kind: input, shape index: {}]   ;;  %s401_s1 = inlined_call_operand.hbm [shape: f32[1,128], index: 1, kind: input, shape index: {}]   ;;  %s402_s2 = inlined_call_operand.vmem [shape: f32[1,128], index: 2, kind: input, shape index: {}]   ;;  %s403_s3 = inlined_call_operand.hbm [shape: f32[128,128], index: 3, kind: input, shape index: {}]   ;;  %s404_s4 = inlined_call_operand.vmem [shape: f32[1,128], index: 4, kind: input, shape index: {}]   ;;  %s405_s5 = inlined_call_operand.hbm [shape: f32[16,128], index: 5, kind: output, shape index: {}]  }
   0x1   :  { %11 = vsyncpa [#allocation6], 0  ;;  %s31_s20 = sshll.u32 %s401_s1, 4  ;;  %s32_s20 = int_to_ptr.hbm [resolvable:$true] %s31_s20 }
   0x2   :  { %12 = vsyncpa [#allocation4], 0  ;;  %s326_s21 = smov [#allocation5]   ;;  %s17_s25 = sshll.u32 %s400_s0, 4  ;;  %s18_s25 = int_to_ptr.hbm [resolvable:$true] %s17_s25 }
   0x3   :  { %s33_s22 = sshll.u32 %s326_s21, 4  ;;  %s327_s26 = smov [#allocation2]   ;;  %s34_s22 = int_to_ptr.vmem [resolvable:$true] %s33_s22 }
   0x4   :  { %36 = dma.hbm_to_vmem [thread:$0]  %s32_s20, 16, %s34_s22, [#allocation6]  }
   0x5   :  { %s19_s27 = sshll.u32 %s327_s26, 4  ;;  %s328_s28 = smov 128   ;;  %s20_s27 = int_to_ptr.vmem [resolvable:$true] %s19_s27 }
   0x6   :  { %s329_s29 = smov 8   ;;  %s43_s6 = sshll.u32 %s403_s3, 4  ;;  %s44_s6 = int_to_ptr.hbm [resolvable:$true] %s43_s6 }
   0x7   :  { %25 = dma.hbm_to_vmem [thread:$0]  %s18_s25, 256, %s20_s27, [#allocation3], %s328_s28, %s328_s28, %s329_s29  }
   0x8   :  { %s330_s7 = smov [#allocation7]  }
   0x9   :  { %s45_s8 = sshll.u32 %s330_s7, 4  ;;  %s46_s8 = int_to_ptr.vmem [resolvable:$true] %s45_s8 }
   0xa   :  { %51 = dma.hbm_to_vmem [thread:$0]  %s44_s6, 2048, %s46_s8, [#allocation6], %s328_s28, %s328_s28, %s329_s29  }
   0xb   :  { %320 = dma.done.wait [#allocation3], 256  }
   0xc   :  { %321 = vsyncadd [#allocation3], 4294967040 }
   0xd   :  { %322 = dma.done.wait [#allocation6], 2064  }
   0xe   :  { %323 = vsyncadd [#allocation6], 4294965232  ;;  %v66_v0 = vld [vmem:[#allocation2] sm:$0xff]  ;;  %v67_v1 = vld [vmem:[#allocation2 + $0x8] sm:$0xff]  ;;  %v331_v2 = vmov 128.0   ;;  %s178_s14 = sshll.u32 %s405_s5, 4  ;;  %s179_s14 = int_to_ptr.hbm [resolvable:$true] %s178_s14 }
   0xf   :  { %68 = vadd.xlane.f32.xlu0 %v66_v0  ;;  %218 = vrcp.f32 %v331_v2  ;;  %v142_v5 = vld [vmem:[#allocation7 + $0x78] sm:$0xff]  ;;  %v141_v6 = vld [vmem:[#allocation7 + $0x70] sm:$0xff]  ;;  %v140_v19 = vld [vmem:[#allocation7 + $0x68] sm:$0xff] }
  0x10   :  { %147 = vmatpush.msra.mxu0 %v142_v5  ;;  %192 = vmatpush.msra.mxu1 %v142_v5  ;;  %v139_v20 = vld [vmem:[#allocation7 + $0x60] sm:$0xff]  ;;  %v138_v21 = vld [vmem:[#allocation7 + $0x58] sm:$0xff]  ;;  %v137_v22 = vld [vmem:[#allocation7 + $0x50] sm:$0xff] }
  0x11   :  { %v136_v23 = vld [vmem:[#allocation7 + $0x48] sm:$0xff]  ;;  %v135_v24 = vld [vmem:[#allocation7 + $0x40] sm:$0xff]  ;;  %v134_v25 = vld [vmem:[#allocation7 + $0x38] sm:$0xff] }
  0x12   :  { %148 = vmatpush.msra.mxu0 %v141_v6  ;;  %193 = vmatpush.msra.mxu1 %v141_v6  ;;  %v133_v26 = vld [vmem:[#allocation7 + $0x30] sm:$0xff]  ;;  %v132_v27 = vld [vmem:[#allocation7 + $0x28] sm:$0xff]  ;;  %v131_v28 = vld [vmem:[#allocation7 + $0x20] sm:$0xff] }
  0x13   :  { %v130_v29 = vld [vmem:[#allocation7 + $0x18] sm:$0xff]  ;;  %v129_v30 = vld [vmem:[#allocation7 + $0x10] sm:$0xff]  ;;  %v128_v31 = vld [vmem:[#allocation7 + $0x8] sm:$0xff] }
  0x14   :  { %149 = vmatpush.msra.mxu0 %v140_v19  ;;  %194 = vmatpush.msra.mxu1 %v140_v19  ;;  %v127_v32 = vld [vmem:[#allocation7] sm:$0xff]  ;;  %v215_v47 = vld [vmem:[#allocation5] ss:$0 sm:$0xff]  ;;  %v216_v51 = vld [vmem:[%s402_s2] ss:$0 sm:$0xff]  ;;  %s332_s2 = smov [#allocation8]  }
  0x15   :  { %v219_v3 = vpop.eup %218  ;;  %v217_v61 = vld [vmem:[%s404_s4] ss:$0 sm:$0xff]  ;;  %s176_s11 = sshll.u32 %s332_s2, 4  ;;  %s177_s11 = int_to_ptr.vmem [resolvable:$true] %s176_s11 }
  0x16   :  { %v73_v4 = vmul.f32 128.0, %v219_v3  ;;  %vm77_vm0 = vweird.f32 %v219_v3  ;;  %150 = vmatpush.msra.mxu0 %v139_v20  ;;  %195 = vmatpush.msra.mxu1 %v139_v20 }
  0x17   :  { %70 = vadd.xlane.f32.xlu0 %v67_v1 }
  0x18   :  { %v74_v7 = vsub.f32 1.0, %v73_v4  ;;  %151 = vmatpush.msra.mxu0 %v138_v21  ;;  %196 = vmatpush.msra.mxu1 %v138_v21 }
  0x1a   :  { %v75_v8 = vmul.f32 %v219_v3, %v74_v7  ;;  %152 = vmatpush.msra.mxu0 %v137_v22  ;;  %197 = vmatpush.msra.mxu1 %v137_v22 }
  0x1c   :  { %v76_v9 = vadd.f32 %v219_v3, %v75_v8  ;;  %153 = vmatpush.msra.mxu0 %v136_v23  ;;  %198 = vmatpush.msra.mxu1 %v136_v23 }
  0x1e   :  { %v78_v10 = vsel %vm77_vm0, %v219_v3, %v76_v9  ;;  %154 = vmatpush.msra.mxu0 %v135_v24  ;;  %199 = vmatpush.msra.mxu1 %v135_v24 }
  0x20   :  { %155 = vmatpush.msra.mxu0 %v134_v25  ;;  %200 = vmatpush.msra.mxu1 %v134_v25 }
  0x22   :  { %156 = vmatpush.msra.mxu0 %v133_v26  ;;  %201 = vmatpush.msra.mxu1 %v133_v26 }
  0x24   :  { %157 = vmatpush.msra.mxu0 %v132_v27  ;;  %202 = vmatpush.msra.mxu1 %v132_v27 }
  0x26   :  { %158 = vmatpush.msra.mxu0 %v131_v28  ;;  %203 = vmatpush.msra.mxu1 %v131_v28 }
  0x28   :  { %159 = vmatpush.msra.mxu0 %v130_v29  ;;  %204 = vmatpush.msra.mxu1 %v130_v29 }
  0x2a   :  { %160 = vmatpush.msra.mxu0 %v129_v30  ;;  %205 = vmatpush.msra.mxu1 %v129_v30 }
  0x2c   :  { %161 = vmatpush.msra.mxu0 %v128_v31  ;;  %206 = vmatpush.msra.mxu1 %v128_v31 }
  0x2e   :  { %162 = vmatpush.msra.mxu0 %v127_v32  ;;  %207 = vmatpush.msra.mxu1 %v127_v32 }
  0x82   :  { %v69_v11 = vpop.xlane.xlu0 %68 }
  0x83   :  { %v79_v12 = vmul.f32 %v78_v10, %v69_v11 }
  0x85   :  { %v378_v13 = vsub.f32 %v66_v0, %v79_v12 }
  0x87   :  { %v83_v14 = vmul.f32 %v378_v13, %v378_v13 }
  0x89   :  { %85 = vadd.xlane.f32.xlu1 %v83_v14 }
  0x8a   :  { %v71_v15 = vpop.xlane.xlu0 %70 }
  0x8b   :  { %v80_v16 = vmul.f32 %v78_v10, %v71_v15 }
  0x8d   :  { %v382_v17 = vsub.f32 %v67_v1, %v80_v16 }
  0x8f   :  { %v84_v18 = vmul.f32 %v382_v17, %v382_v17 }
  0x91   :  { %87 = vadd.xlane.f32.xlu1 %v84_v18 }
  0xfc   :  { %v86_v33 = vpop.xlane.xlu1 %85 }
  0xfd   :  { %v89_v34 = vmul.f32 %v86_v33, %v78_v10 }
  0xff   :  { %v91_v35 = vadd.f32 1e-05, %v89_v34 }
 0x101   :  { %220 = vrsqrt.f32 %v91_v35  ;;  %vm99_vm2 = vweird.f32 %v91_v35 }
 0x104   :  { %v88_v36 = vpop.xlane.xlu1 %87 }
 0x105   :  { %v90_v37 = vmul.f32 %v88_v36, %v78_v10 }
 0x107   :  { %v221_v38 = vpop.eup %220  ;;  %v92_v39 = vadd.f32 1e-05, %v90_v37 }
 0x108   :  { %v94_v40 = vmul.f32 %v221_v38, %v91_v35  ;;  %vm100_vm1 = vweird.f32 %v221_v38 }
 0x109   :  { %222 = vrsqrt.f32 %v92_v39  ;;  %vm101_vm3 = vmor %vm99_vm2, %vm100_vm1  ;;  %vm109_vm5 = vweird.f32 %v92_v39 }
 0x10a   :  { %v95_v41 = vmul.f32 %v221_v38, %v94_v40 }
 0x10c   :  { %v96_v42 = vmul.f32 0.5, %v95_v41 }
 0x10e   :  { %v97_v43 = vsub.f32 1.5, %v96_v42 }
 0x10f   :  { %v223_v44 = vpop.eup %222 }
 0x110   :  { %v98_v45 = vmul.f32 %v221_v38, %v97_v43  ;;  %v104_v46 = vmul.f32 %v223_v44, %v92_v39  ;;  %vm110_vm4 = vweird.f32 %v223_v44 }
 0x111   :  { %vm111_vm6 = vmor %vm109_vm5, %vm110_vm4 }
 0x112   :  { %v105_v48 = vmul.f32 %v223_v44, %v104_v46  ;;  %v102_v49 = vsel %vm101_vm3, %v221_v38, %v98_v45 }
 0x113   :  { %v113_v50 = vmul.f32 %v102_v49, %v378_v13 }
 0x114   :  { %v106_v52 = vmul.f32 0.5, %v105_v48 }
 0x115   :  { %v119_v53 = vmul.f32 %v215_v47, %v113_v50 }
 0x116   :  { %v107_v54 = vsub.f32 1.5, %v106_v52 }
 0x117   :  { %v125_v55 = vadd.f32 %v216_v51, %v119_v53 }
 0x118   :  { %v108_v56 = vmul.f32 %v223_v44, %v107_v54 }
 0x119   :  { %163 = vmatmul.f32.vlgmr.msra.gmra.mxu0 %v125_v55 }
 0x11a   :  { %v112_v57 = vsel %vm111_vm6, %v223_v44, %v108_v56 }
 0x11b   :  { %v114_v58 = vmul.f32 %v112_v57, %v382_v17 }
 0x11d   :  { %v120_v59 = vmul.f32 %v215_v47, %v114_v58 }
 0x11f   :  { %v126_v60 = vadd.f32 %v216_v51, %v120_v59 }
 0x121   :  { %166 = vmatmul.f32.vlgmr.msra.gmra.mxu1 %v126_v60 }
 0x196   :  { %v164_v62 = vpop.f32.mrf.mxu0 }
 0x197   :  { %v165_v63 = vadd.f32 %v217_v61, %v164_v62 }
 0x199   :  { %170 = vst [vmem:[#allocation8] sm:$0xff] %v165_v63 }
 0x19e   :  { %v167_v0 = vpop.f32.mrf.mxu1 }
 0x19f   :  { %v168_v1 = vadd.f32 %v217_v61, %v167_v0 }
 0x1a1   :  { %171 = vst [vmem:[#allocation8 + $0x8] sm:$0xff] %v168_v1 }
 0x1a2   :  { %184 = dma.vmem_to_hbm [thread:$0]  %s177_s11, 256, %s179_s14, [#allocation4], %s328_s28, %s328_s28, %s329_s29  }
 0x1a3   :  { %324 = dma.done.wait [#allocation4], 256  }
 0x1a4   :  { %325 = vsyncadd [#allocation4], 4294967040 }
 0x1a5   :  { %189 = vsyncpa [#allocation3], 1 }
 0x1a6   :  { %190 = vsyncpa [#allocation6], 1 }
 0x1a7   :  { %191 = vsyncpa [#allocation4], 1 }

</bundles_post_ra>
